<compile_context>
chip_gen: v7x
topology: tpu7x:2x2x1
jax: 0.10.0
libtpu: 0.0.40
codegen_flags: <defaults>
</compile_context>

<pallas_src>
import math

import jax
import jax.numpy as jnp
from jax.experimental import pallas as pl
from jax.experimental.pallas import tpu as pltpu


_LANE = 128          # lane width of a vreg (last dim)
_SUBLANE = 8         # sublane count of a vreg (second-last dim)
_MAX_BATCH_TILE = 256  # rows per grid step; amortizes ~0.35us/step, fits VMEM on v5e/v6e/v7x


def _round_up(n: int, m: int) -> int:
    return ((n + m - 1) // m) * m


def _fused_autoencoder_kernel(x_ref, w_ref, b_ref, o_ref):
    """One batch tile of y = sigmoid(x @ W_fused + b_fused).

    x_ref : [TB, Dp]  input tile (zero-padded, lane-dense)
    w_ref : [Dp, Dp]  fused encoder∘decoder weight (resident across tiles)
    b_ref : [1, Dp]   fused bias (resident across tiles)
    o_ref : [TB, Dp]  output tile
    """
    y = jnp.dot(x_ref[...], w_ref[...], preferred_element_type=jnp.float32)
    y = y + b_ref[...]
    o_ref[...] = jax.nn.sigmoid(y).astype(o_ref.dtype)


def fuse_autoencoder_params(w_enc, b_enc, w_dec, b_dec):
    """Fold encoder->decoder (no nonlinearity in between) into one affine map.

    Inputs use the PyTorch nn.Linear layout:
        w_enc: [L, D], b_enc: [L], w_dec: [D, L], b_dec: [D]

    Returns zero-padded, lane-dense parameters:
        w_fused_p: [Dp, Dp]  with  x @ w_fused == (x @ We^T) @ Wd^T
        b_fused_p: [1, Dp]   with  b_fused == be @ Wd^T + bd

    Call ONCE at init time (weights are static) so no transpose / fusion work
    sits on the per-forward hot path.
    """
    L, D = w_enc.shape
    Dp = _round_up(D, _LANE)

    w_fused = jnp.dot(w_enc.T, w_dec.T, preferred_element_type=jnp.float32)        # [D, D]
    b_fused = jnp.dot(b_enc, w_dec.T, preferred_element_type=jnp.float32) + b_dec  # [D]

    w_fused_p = jnp.zeros((Dp, Dp), w_fused.dtype).at[:D, :D].set(w_fused)
    b_fused_p = jnp.zeros((1, Dp), b_fused.dtype).at[0, :D].set(b_fused)
    return w_fused_p, b_fused_p


def autoencoder_forward(x, w_fused_p, b_fused_p):
    """x: [B, D] -> sigmoid((x @ We^T + be) @ Wd^T + bd): [B, D]."""
    B, D = x.shape
    Dp = w_fused_p.shape[0]

    # Batch tile: big enough to amortize per-grid-step overhead, small enough
    # that 2x(double-buffered x tile + out tile) + resident [Dp, Dp] weight
    # stays well under the scoped-VMEM limits on every generation (incl. the
    # 64 MiB/TC budget on v7x).
    TB = min(_round_up(B, _SUBLANE), _MAX_BATCH_TILE)
    Bp = _round_up(B, TB)

    # Zero-pad to lane-dense / tile-aligned shapes (padded lanes are cropped
    # after the call; padded rows of W are zero so they cannot leak in).
    x_p = jnp.pad(x, ((0, Bp - B), (0, Dp - D)))

    out_p = pl.pallas_call(
        _fused_autoencoder_kernel,
        out_shape=jax.ShapeDtypeStruct((Bp, Dp), x.dtype),
        grid_spec=pl.GridSpec(
            grid=(Bp // TB,),
            in_specs=[
                pl.BlockSpec((TB, Dp), lambda i: (i, 0)),  # x: tiled over batch
                pl.BlockSpec((Dp, Dp), lambda i: (0, 0)),  # fused weight: resident
                pl.BlockSpec((1, Dp), lambda i: (0, 0)),   # fused bias: resident
            ],
            out_specs=pl.BlockSpec((TB, Dp), lambda i: (i, 0)),
        ),
        compiler_params=pltpu.CompilerParams(
            # Batch tiles are independent -> both TensorCores on v7x.
            dimension_semantics=("parallel",),
        ),
    )(x_p, w_fused_p, b_fused_p)

    return out_p[:B, :D]


def init_autoencoder_params(key, latent_dims, output_dims, dtype=jnp.float32):
    """Deterministic init mimicking PyTorch nn.Linear default (U[-1/sqrt(fan_in), +])."""
    k1, k2, k3, k4 = jax.random.split(key, 4)
    # Encoder: Linear(output_dims -> latent_dims)
    bound_e = 1.0 / math.sqrt(output_dims)
    w_enc = jax.random.uniform(k1, (latent_dims, output_dims), dtype,
                               minval=-bound_e, maxval=bound_e)
    b_enc = jax.random.uniform(k2, (latent_dims,), dtype,
                               minval=-bound_e, maxval=bound_e)
    # Decoder: Linear(latent_dims -> output_dims)
    bound_d = 1.0 / math.sqrt(latent_dims)
    w_dec = jax.random.uniform(k3, (output_dims, latent_dims), dtype,
                               minval=-bound_d, maxval=bound_d)
    b_dec = jax.random.uniform(k4, (output_dims,), dtype,
                               minval=-bound_d, maxval=bound_d)
    return w_enc, b_enc, w_dec, b_dec


def autoencoder_reference(x, w_enc, b_enc, w_dec, b_dec):
    """Pure-JAX reference matching the PyTorch forward semantics."""
    z = x @ w_enc.T + b_enc
    y = z @ w_dec.T + b_dec
    return jax.nn.sigmoid(y)


if __name__ == "__main__":
    batch = 16
    output_dims = 64
    latent_dims = 8

    key = jax.random.PRNGKey(0)
    kx, kp = jax.random.split(key)

    x = jax.random.normal(kx, (batch, output_dims), dtype=jnp.float32)
    w_enc, b_enc, w_dec, b_dec = init_autoencoder_params(
        kp, latent_dims, output_dims, dtype=jnp.float32
    )

    # One-time parameter fusion (static weights -> out of the hot path).
    w_fused_p, b_fused_p = fuse_autoencoder_params(w_enc, b_enc, w_dec, b_dec)

    out = autoencoder_forward(x, w_fused_p, b_fused_p)
    out = jax.block_until_ready(out)

    ref = autoencoder_reference(x, w_enc, b_enc, w_dec, b_dec)
    assert out.shape == (batch, output_dims)
    assert jnp.allclose(out, ref, atol=1e-5, rtol=1e-5), "mismatch vs reference"

    print("KERNEL_OK")
</pallas_src>

<mosaic_0001>
module attributes {stable_mosaic.version = 11 : i64} {
  func.func @_fused_autoencoder_kernel(%arg0: i32, %arg1: memref<16x128xf32, #tpu.memory_space<vmem>>, %arg2: memref<128x128xf32, #tpu.memory_space<vmem>>, %arg3: memref<1x128xf32, #tpu.memory_space<vmem>>, %arg4: memref<16x128xf32, #tpu.memory_space<vmem>>) attributes {dimension_semantics = [#tpu.dimension_semantics<parallel>], iteration_bounds = array<i64: 1>, scalar_prefetch = 0 : i64, scratch_operands = 0 : i64, tpu.core_type = #tpu.core_type<tc>, window_params = [{transform_indices = @transform_0, window_bounds = array<i64: 16, 128>}, {pipeline_mode = #tpu.pipeline_mode<synchronous>, transform_indices = @transform_1, window_bounds = array<i64: 128, 128>}, {pipeline_mode = #tpu.pipeline_mode<synchronous>, transform_indices = @transform_2, window_bounds = array<i64: 1, 128>}, {transform_indices = @transform_3, window_bounds = array<i64: 16, 128>}]} {
    %c0 = arith.constant 0 : index
    %c0_0 = arith.constant 0 : index
    %0 = vector.load %arg1[%c0, %c0_0] : memref<16x128xf32, #tpu.memory_space<vmem>>, vector<16x128xf32>
    %c0_1 = arith.constant 0 : index
    %c0_2 = arith.constant 0 : index
    %1 = vector.load %arg2[%c0_1, %c0_2] : memref<128x128xf32, #tpu.memory_space<vmem>>, vector<128x128xf32>
    %cst = arith.constant dense<0.000000e+00> : vector<16x128xf32>
    %2 = tpu.matmul %0, %1, %cst {dimension_numbers = #tpu.dot_dimension_numbers<[1], [0], [0], [1], [0, 0, 1, 1], [], []>} : vector<16x128xf32>, vector<128x128xf32>, vector<16x128xf32> -> vector<16x128xf32>
    %c0_3 = arith.constant 0 : index
    %c0_4 = arith.constant 0 : index
    %3 = vector.load %arg3[%c0_3, %c0_4] : memref<1x128xf32, #tpu.memory_space<vmem>>, vector<1x128xf32>
    %4 = vector.broadcast %3 : vector<1x128xf32> to vector<16x128xf32>
    %5 = arith.addf %2, %4 : vector<16x128xf32>
    %6 = arith.negf %5 : vector<16x128xf32>
    %7 = math.exp %6 : vector<16x128xf32>
    %cst_5 = arith.constant 1.000000e+00 : f32
    %8 = vector.broadcast %cst_5 : f32 to vector<16x128xf32>
    %9 = arith.addf %8, %7 : vector<16x128xf32>
    %10 = arith.divf %8, %9 : vector<16x128xf32>
    %c0_6 = arith.constant 0 : index
    %c0_7 = arith.constant 0 : index
    %11 = vector.load %arg4[%c0_6, %c0_7] : memref<16x128xf32, #tpu.memory_space<vmem>>, vector<16x128xf32>
    tpu.vector_store %arg4[%c0_6, %c0_7], %10 {strides = array<i32>} : memref<16x128xf32, #tpu.memory_space<vmem>>, vector<16x128xf32>,
    return
  }
  func.func @transform_0(%arg0: i32) -> (i32, i32) {
    %c0_i32 = arith.constant 0 : i32
    %c0_i32_0 = arith.constant 0 : i32
    return %arg0, %c0_i32 : i32, i32
  }
  func.func @transform_1(%arg0: i32) -> (i32, i32) {
    %c0_i32 = arith.constant 0 : i32
    %c0_i32_0 = arith.constant 0 : i32
    %c0_i32_1 = arith.constant 0 : i32
    return %c0_i32, %c0_i32_0 : i32, i32
  }
  func.func @transform_2(%arg0: i32) -> (i32, i32) {
    %c0_i32 = arith.constant 0 : i32
    %c0_i32_0 = arith.constant 0 : i32
    %c0_i32_1 = arith.constant 0 : i32
    return %c0_i32, %c0_i32_0 : i32, i32
  }
  func.func @transform_3(%arg0: i32) -> (i32, i32) {
    %c0_i32 = arith.constant 0 : i32
    %c0_i32_0 = arith.constant 0 : i32
    return %arg0, %c0_i32 : i32, i32
  }
}

</mosaic_0001>

<bundles_post_ra>
// kernel: tpu_custom_call.1
= control target key start
LH: loop header
LB: loop body
LE: loop exit
PB: predicated region body
PF: predicated region fallthrough
CT: control target
= control target key end

     0   :  { %8 = vsyncpa [#allocation3], 0  ;;  %s421_s0 = inlined_call_operand.hbm [shape: f32[16,128], index: 0, kind: input, shape index: {}]   ;;  %s422_s1 = inlined_call_operand.hbm [shape: f32[128,128], index: 1, kind: input, shape index: {}]   ;;  %s423_s2 = inlined_call_operand.vmem [shape: f32[1,128], index: 2, kind: input, shape index: {}]   ;;  %s424_s3 = inlined_call_operand.hbm [shape: f32[16,128], index: 3, kind: output, shape index: {}]  }
   0x1   :  { %9 = vsyncpa [#allocation6], 0 }
   0x2   :  { %10 = vsyncpa [#allocation4], 0  ;;  %s348_s12 = smov [#allocation2]   ;;  %s276_s16 = scalar_lea.hbm %s421_s0, 256 }
   0x3   :  { %s16_s13 = sshll.u32 %s348_s12, 4  ;;  %p277_p0 = scmp.ne.s32.totalorder %s421_s0, %s276_s16  ;;  %s17_s13 = int_to_ptr.vmem [resolvable:$true] %s16_s13 }
   0x4   :  { %p280_p1 = scmp.lt.u32.totalorder %s276_s16, %s421_s0 }
   0x6   :  { %p282_p2 = pnand %p280_p1, %p277_p0 }
   0x8   :  { %285 = shalt.err (!%p282_p2)
}
   0x9   :  { %s286_s21 = scalar_lea.vmem %s17_s13, 256  ;;  %p291_p4 = scmp.lt.s32.totalorder %s17_s13, %s17_s13 }
   0xa   :  { %p287_p3 = scmp.ne.s32.totalorder %s17_s13, %s286_s21  ;;  %p292_p5 = scmp.lt.s32.totalorder %s286_s21, %s286_s21 }
   0xc   :  { %p293_p6 = por %p292_p5, %p291_p4 }
   0xe   :  { %p294_p7 = pnand %p293_p6, %p287_p3 }
  0x10   :  { %297 = shalt.err (!%p294_p7)
}
  0x11   :  { %s349_s22 = smov 128   ;;  %s350_s23 = smov 8  }
  0x12   :  { %22 = dma.hbm_to_vmem [thread:$0]  %s421_s0, 256, %s17_s13, [#allocation3], %s349_s22, %s349_s22, %s350_s23  }
  0x13   :  { %s351_s26 = smov [#allocation5]   ;;  %s298_s30 = scalar_lea.hbm %s422_s1, 2048 }
  0x14   :  { %s28_s27 = sshll.u32 %s351_s26, 4  ;;  %p299_p8 = scmp.ne.s32.totalorder %s422_s1, %s298_s30  ;;  %s29_s27 = int_to_ptr.vmem [resolvable:$true] %s28_s27 }
  0x15   :  { %p302_p9 = scmp.lt.u32.totalorder %s298_s30, %s422_s1 }
  0x17   :  { %p304_p10 = pnand %p302_p9, %p299_p8 }
  0x19   :  { %307 = shalt.err (!%p304_p10)
}
  0x1a   :  { %s308_s8 = scalar_lea.vmem %s29_s27, 2048  ;;  %p313_p12 = scmp.lt.s32.totalorder %s29_s27, %s29_s27 }
  0x1b   :  { %p309_p11 = scmp.ne.s32.totalorder %s29_s27, %s308_s8  ;;  %p314_p13 = scmp.lt.s32.totalorder %s308_s8, %s308_s8 }
  0x1d   :  { %p315_p0 = por %p314_p13, %p313_p12 }
  0x1f   :  { %p316_p1 = pnand %p315_p0, %p309_p11 }
  0x21   :  { %319 = shalt.err (!%p316_p1)
}
  0x22   :  { %34 = dma.hbm_to_vmem [thread:$0]  %s422_s1, 2048, %s29_s27, [#allocation6], %s349_s22, %s349_s22, %s350_s23  }
  0x23   :  { %342 = dma.done.wait [#allocation3], 256  }
  0x24   :  { %343 = vsyncadd [#allocation3], 4294967040 }
  0x25   :  { %344 = dma.done.wait [#allocation6], 2048  }
  0x26   :  { %345 = vsyncadd [#allocation6], 4294965248  ;;  %v45_v0 = vld [vmem:[#allocation5] sm:$0xff]  ;;  %v46_v1 = vld [vmem:[#allocation5 + $0x8] sm:$0xff]  ;;  %s352_s11 = smov [#allocation7]  }
  0x27   :  { %v47_v2 = vld [vmem:[#allocation5 + $0x10] sm:$0xff]  ;;  %v231_v3 = vpack.c.bf16 %v46_v1, %v45_v0  ;;  %v48_v4 = vld [vmem:[#allocation5 + $0x18] sm:$0xff]  ;;  %v49_v6 = vld [vmem:[#allocation5 + $0x20] sm:$0xff]  ;;  %s162_s12 = sshll.u32 %s352_s11, 4  ;;  %s163_s12 = int_to_ptr.vmem [resolvable:$true] %s162_s12 }
  0x28   :  { %v235_v5 = vpack.c.bf16 %v48_v4, %v47_v2  ;;  %v50_v7 = vld [vmem:[#allocation5 + $0x28] sm:$0xff]  ;;  %v43_v9 = vld [vmem:[#allocation2] sm:$0xff]  ;;  %v52_v11 = vld [vmem:[#allocation5 + $0x38] sm:$0xff]  ;;  %p325_p3 = scmp.lt.s32.totalorder %s163_s12, %s163_s12 }
  0x29   :  { %232 = vmatprep.subr.bf16.mxu0 %v231_v3  ;;  %v239_v8 = vpack.c.bf16 %v50_v7, %v49_v6  ;;  %v51_v10 = vld [vmem:[#allocation5 + $0x30] sm:$0xff]  ;;  %228 = vmatprep.mubr.f32.mxu0 %v43_v9  ;;  %v53_v13 = vld [vmem:[#allocation5 + $0x40] sm:$0xff]  ;;  %v54_v14 = vld [vmem:[#allocation5 + $0x48] sm:$0xff] }
  0x2a   :  { %234 = vmatpush3.bf16.msra.mxu0 %v231_v3  ;;  %v243_v12 = vpack.c.bf16 %v52_v11, %v51_v10  ;;  %v247_v15 = vpack.c.bf16 %v54_v14, %v53_v13  ;;  %v55_v16 = vld [vmem:[#allocation5 + $0x50] sm:$0xff]  ;;  %v56_v17 = vld [vmem:[#allocation5 + $0x58] sm:$0xff]  ;;  %v57_v19 = vld [vmem:[#allocation5 + $0x60] sm:$0xff] }
  0x2b   :  { %236 = vmatprep.subr.bf16.mxu0 %v235_v5  ;;  %v251_v18 = vpack.c.bf16 %v56_v17, %v55_v16  ;;  %v58_v20 = vld [vmem:[#allocation5 + $0x68] sm:$0xff]  ;;  %v59_v22 = vld [vmem:[#allocation5 + $0x70] sm:$0xff]  ;;  %v60_v23 = vld [vmem:[#allocation5 + $0x78] sm:$0xff] }
  0x2c   :  { %v255_v21 = vpack.c.bf16 %v58_v20, %v57_v19  ;;  %v259_v24 = vpack.c.bf16 %v60_v23, %v59_v22  ;;  %v44_v25 = vld [vmem:[#allocation2 + $0x8] sm:$0xff]  ;;  %v175_v26 = vld [vmem:[%s423_s2] ss:$0 sm:$0xff]  ;;  %s320_s2 = scalar_lea.vmem %s163_s12, 256 }
  0x2d   :  { %p321_p2 = scmp.ne.s32.totalorder %s163_s12, %s320_s2  ;;  %p326_p4 = scmp.lt.s32.totalorder %s320_s2, %s320_s2 }
  0x2e   :  { %238 = vmatpush3.bf16.msra.mxu0 %v235_v5 }
  0x2f   :  { %240 = vmatprep.subr.bf16.mxu0 %v239_v8  ;;  %p327_p5 = por %p326_p4, %p325_p3 }
  0x31   :  { %p328_p6 = pnand %p327_p5, %p321_p2 }
  0x32   :  { %242 = vmatpush3.bf16.msra.mxu0 %v239_v8 }
  0x33   :  { %244 = vmatprep.subr.bf16.mxu0 %v243_v12 }
  0x36   :  { %246 = vmatpush3.bf16.msra.mxu0 %v243_v12 }
  0x37   :  { %248 = vmatprep.subr.bf16.mxu0 %v247_v15 }
  0x3a   :  { %250 = vmatpush3.bf16.msra.mxu0 %v247_v15 }
  0x3b   :  { %252 = vmatprep.subr.bf16.mxu0 %v251_v18 }
  0x3e   :  { %254 = vmatpush3.bf16.msra.mxu0 %v251_v18 }
  0x3f   :  { %256 = vmatprep.subr.bf16.mxu0 %v255_v21 }
  0x42   :  { %258 = vmatpush3.bf16.msra.mxu0 %v255_v21 }
  0x43   :  { %260 = vmatprep.subr.bf16.mxu0 %v259_v24 }
  0x46   :  { %262 = vmatpush3.bf16.msra.mxu0 %v259_v24 }
  0x49   :  { %229 = vmatmul.mubr.f32.vlgmr.msra.gmra.mrb[0].mxu0 %v44_v25 }
 0x11c   :  { %v230_v27 = vpop.f32.mrb[0].mxu0 }
 0x11d   :  { %v140_v28 = vadd.f32 %v230_v27, %v175_v26  ;;  %v134_v29 = vpop.f32.mrb[1].mxu0 }
 0x11e   :  { %v135_v30 = vadd.f32 %v175_v26, %v134_v29 }
 0x11f   :  { %v177_v31 = vmul.f32 -1.442695, %v140_v28 }
 0x120   :  { %v176_v32 = vmul.f32 -1.442695, %v135_v30 }
 0x121   :  { %268 = vpow2.f32 %v177_v31 }
 0x122   :  { %270 = vpow2.f32 %v176_v32 }
 0x12b   :  { %v269_v33 = vpop.eup %268 }
 0x12c   :  { %v271_v34 = vpop.eup %270  ;;  %v150_v35 = vadd.f32 1.0, %v269_v33 }
 0x12d   :  { %v149_v36 = vadd.f32 1.0, %v271_v34 }
 0x12e   :  { %272 = vrcp.f32 %v150_v35 }
 0x12f   :  { %274 = vrcp.f32 %v149_v36 }
 0x138   :  { %v273_v37 = vpop.eup %272 }
 0x139   :  { %v275_v38 = vpop.eup %274  ;;  %156 = vst [vmem:[#allocation7 + $0x8] sm:$0xff] %v273_v37 }
 0x13a   :  { %155 = vst [vmem:[#allocation7] sm:$0xff] %v275_v38 }
 0x13b   :  { %331 = shalt.err (!%p328_p6)
}
 0x13c   :  { %s332_s15 = scalar_lea.hbm %s424_s3, 256 }
 0x13d   :  { %p333_p7 = scmp.ne.s32.totalorder %s424_s3, %s332_s15  ;;  %p336_p8 = scmp.lt.u32.totalorder %s332_s15, %s424_s3 }
 0x13f   :  { %p338_p9 = pnand %p336_p8, %p333_p7 }
 0x141   :  { %341 = shalt.err (!%p338_p9)
}
 0x142   :  { %168 = dma.vmem_to_hbm [thread:$0]  %s163_s12, 256, %s424_s3, [#allocation4], %s349_s22, %s349_s22, %s350_s23  }
 0x143   :  { %346 = dma.done.wait [#allocation4], 256  }
 0x144   :  { %347 = vsyncadd [#allocation4], 4294967040 }
 0x145   :  { %172 = vsyncpa [#allocation3], 1 }
 0x146   :  { %173 = vsyncpa [#allocation6], 1 }
 0x147   :  { %174 = vsyncpa [#allocation4], 1 }

</bundles_post_ra>
